<compile_context>
chip_gen: v7x
topology: tpu7x:2x2x1
jax: 0.10.0
libtpu: 0.0.40
codegen_flags: <defaults>
</compile_context>

<pallas_src>
import numpy as np
import jax
import jax.numpy as jnp
from jax.experimental import pallas as pl
from jax.experimental.pallas import tpu as pltpu


def _pad_rows(a, rows):
    return jnp.pad(a, ((0, rows - a.shape[0]), (0, 0)))


# ----------------------------------------------------------------------------
# Pallas kernel: one grid step == one block of Bt batch elements, all in VMEM.
# Every tensor is channel-first with HW on the 128-lane axis.
# ----------------------------------------------------------------------------
def _rga_spatial_kernel(x_ref,        # (Bt, C, HW)
                        wproj_ref,    # (4*ICp, C)   rows: phi | theta | phi | gx
                        wgg_ref,      # (2*IS, HW)   rows: Wgg_in | Wgg_out
                        w1gg_ref,     # (NDp, IS)
                        w2_ref,       # (1, NDp)
                        bias_ref,     # (>=4*ICp+IS+2*NDp+1, 1) packed bias slab
                        o_ref):       # (Bt, C, HW)
    f32 = jnp.float32
    bt, C, HW = x_ref.shape
    icp = wproj_ref.shape[0] // 4         # padded per-projection row block (8)
    isp = wgg_ref.shape[0] // 2           # (padded) inter_spatial
    ndp = w1gg_ref.shape[0]               # padded W_spatial hidden dim (8)

    wproj = wproj_ref[...]
    wgg = wgg_ref[...]
    w1gg = w1gg_ref[...]
    w2 = w2_ref[...]
    bias = bias_ref[...]

    o0 = 4 * icp                                           # 8-row-aligned offsets
    bproj = bias[0:o0]                                     # (4*ICp, 1)
    bgg = bias[o0:o0 + isp]                                # (IS, 1)
    b1 = bias[o0 + isp:o0 + isp + ndp]                     # (NDp, 1)
    w1g = bias[o0 + isp + ndp:o0 + isp + 2 * ndp]          # (NDp, 1), 1/IC folded in
    b2 = bias[o0 + isp + 2 * ndp:o0 + isp + 2 * ndp + 1]   # (1, 1)

    # Block-diagonal mask keeping (Wgg_in @ phi^T) and (Wgg_out @ theta^T)
    # in the tiny (2*IS, 2*ICp) intermediate (hoisted out of the batch loop).
    rows = jax.lax.broadcasted_iota(jnp.int32, (2 * isp, 2 * icp), 0)
    cols = jax.lax.broadcasted_iota(jnp.int32, (2 * isp, 2 * icp), 1)
    blkmask = ((rows < isp) == (cols < icp)).astype(f32)

    contract_lanes = (((1,), (1,)), ((), ()))              # contract the HW axes

    for bi in range(bt):                                   # static unroll over Bt
        X = x_ref[bi]                                      # (C, HW)

        # Fused theta/phi/gx 1x1-conv + folded BN + ReLU: one MXU issue.
        proj = jnp.maximum(
            jnp.dot(wproj, X, preferred_element_type=f32) + bproj, 0.0)  # (4*ICp, HW)
        pt = proj[0:2 * icp]            # [phi; theta]    (aligned view)
        tp = proj[icp:3 * icp]          # [theta; phi]    (aligned view, phi dup)
        gx = proj[3 * icp:4 * icp]      # gx (padded rows exactly zero)

        # Low-rank relation term, Gs never materialized:
        #   gg_pre = (Wgg_in @ phi^T) @ theta + (Wgg_out @ theta^T) @ phi
        m = jax.lax.dot_general(wgg, pt, contract_lanes,
                                preferred_element_type=f32)           # (2*IS, 2*ICp)
        gg2 = jnp.dot(m * blkmask, tp, preferred_element_type=f32)    # (2*IS, HW)
        gg = jnp.maximum(gg2[0:isp] + gg2[isp:2 * isp] + bgg, 0.0)    # (IS, HW)

        # gx channel mean (1/IC folded into w1g); sublane-only reduction.
        g_sum = jnp.sum(gx, axis=0, keepdims=True)                    # (1, HW)

        # W_spatial: conv(1+IS -> ND)+BN+ReLU, conv(ND -> 1)+BN, sigmoid.
        h1 = jnp.maximum(
            w1g * g_sum
            + jnp.dot(w1gg, gg, preferred_element_type=f32)
            + b1, 0.0)                                                # (NDp, HW)
        wy = jnp.dot(w2, h1, preferred_element_type=f32) + b2         # (1, HW)
        att = jax.nn.sigmoid(wy)                                      # (1, HW)

        # Reference module returns sigmoid(W_ys).expand_as(x): broadcast in-kernel.
        o_ref[bi] = jnp.broadcast_to(att, (C, HW)).astype(o_ref.dtype)


# ----------------------------------------------------------------------------
# One-time host-side weight packing (padding, fusion, slab concat).
# ----------------------------------------------------------------------------
def pack_rga_weights(params, in_spatial):
    hw = in_spatial
    ic = params["wt"].shape[0]
    isp = params["wgg"].shape[0]
    nd = params["w1"].shape[0]
    icp = max(8, -(-ic // 8) * 8)
    ndp = max(8, -(-nd // 8) * 8)
    isp_p = max(8, -(-isp // 8) * 8)

    # Fused projection (order phi | theta | phi | gx; phi duplicated so both
    # [phi;theta] and [theta;phi] are tile-aligned views in the kernel).
    w_proj = jnp.concatenate([_pad_rows(params["wp"], icp),
                              _pad_rows(params["wt"], icp),
                              _pad_rows(params["wp"], icp),
                              _pad_rows(params["wgx"], icp)], axis=0)
    b_proj = jnp.concatenate([_pad_rows(params["bp"], icp),
                              _pad_rows(params["bt"], icp),
                              _pad_rows(params["bp"], icp),
                              _pad_rows(params["bgx"], icp)], axis=0)

    # gg_spatial weight split into Gs_in / Gs_out halves and row-stacked.
    wgg_cat = jnp.concatenate([_pad_rows(params["wgg"][:, :hw], isp_p),
                               _pad_rows(params["wgg"][:, hw:], isp_p)], axis=0)

    w1_gg = _pad_rows(jnp.pad(params["w1"][:, 1:], ((0, 0), (0, isp_p - isp))), ndp)
    w1_g = _pad_rows(params["w1"][:, 0:1] / ic, ndp)    # fold 1/IC of the gx mean
    b1 = _pad_rows(params["b1"], ndp)
    w2 = jnp.pad(params["w2"], ((0, 0), (0, ndp - nd)))

    bias_slab = jnp.concatenate(
        [b_proj, _pad_rows(params["bgg"], isp_p), b1, w1_g, params["b2"]], axis=0)
    bias_slab = _pad_rows(bias_slab, -(-bias_slab.shape[0] // 8) * 8)   # (88, 1)

    return dict(w_proj=w_proj, wgg_cat=wgg_cat, w1_gg=w1_gg, w2=w2, bias=bias_slab)


# ----------------------------------------------------------------------------
# Wrapper: free NCHW <-> (B, C, HW) reshapes, pallas_call with a parallel grid.
# ----------------------------------------------------------------------------
def rga_spatial_forward(x_nchw, packed):
    b, c, h, w = x_nchw.shape
    hw = h * w
    x_flat = x_nchw.reshape(b, c, hw)                 # channel-first, no transpose

    num_blocks = 2 if (b % 2 == 0 and b >= 2) else 1  # >=2 blocks keeps both v7x TCs busy
    bt = b // num_blocks

    weights = [packed["w_proj"], packed["wgg_cat"], packed["w1_gg"],
               packed["w2"], packed["bias"]]

    in_specs = [pl.BlockSpec((bt, c, hw), lambda i: (i, 0, 0))]
    in_specs += [pl.BlockSpec(wt.shape, lambda i: (0, 0)) for wt in weights]

    icp = packed["w_proj"].shape[0] // 4
    isp_p = packed["wgg_cat"].shape[0] // 2
    ndp = packed["w1_gg"].shape[0]
    flops = 2 * b * (4 * icp * c * hw                 # fused projection
                     + 2 * isp_p * hw * 2 * icp       # K=HW contraction
                     + 2 * isp_p * 2 * icp * hw       # reconstruction
                     + ndp * isp_p * hw               # W_spatial hidden
                     + ndp * hw)                      # final 1-row matmul
    bytes_accessed = 4 * (2 * b * c * hw
                          + sum(int(np.prod(wt.shape)) for wt in weights))
    cost = pl.CostEstimate(flops=int(flops), transcendentals=int(b * hw),
                           bytes_accessed=int(bytes_accessed))

    out_flat = pl.pallas_call(
        _rga_spatial_kernel,
        out_shape=jax.ShapeDtypeStruct((b, c, hw), jnp.float32),
        grid_spec=pltpu.PrefetchScalarGridSpec(
            num_scalar_prefetch=0,
            grid=(num_blocks,),
            in_specs=in_specs,
            out_specs=pl.BlockSpec((bt, c, hw), lambda i: (i, 0, 0)),
        ),
        compiler_params=pltpu.CompilerParams(
            dimension_semantics=("parallel",)),
        cost_estimate=cost,
    )(x_flat, *weights)

    return out_flat.reshape(b, c, h, w)               # free reshape back to NCHW


# ----------------------------------------------------------------------------
# Deterministic parameter construction (conv weight + folded BatchNorm),
# channel-first: weight (c_out, c_in), bias (c_out, 1).
# ----------------------------------------------------------------------------
def _fold_conv_bn(key, c_in, c_out, eps=1e-5):
    k0, k1, k2, k3, k4 = jax.random.split(key, 5)
    w = jax.random.normal(k0, (c_out, c_in), jnp.float32) / np.sqrt(c_in)
    gamma = jax.random.uniform(k1, (c_out,), jnp.float32, 0.5, 1.5)
    beta = 0.1 * jax.random.normal(k2, (c_out,), jnp.float32)
    mean = 0.1 * jax.random.normal(k3, (c_out,), jnp.float32)
    var = jax.random.uniform(k4, (c_out,), jnp.float32, 0.5, 1.5)
    scale = gamma / jnp.sqrt(var + eps)
    w_eff = w * scale[:, None]
    b_eff = (beta - mean * scale)[:, None]
    return w_eff, b_eff


def init_params(key, in_channel, in_spatial,
                cha_ratio=8, spa_ratio=8, down_ratio=8):
    ic = in_channel // cha_ratio
    isp = in_spatial // spa_ratio
    ns = 1 + isp
    nd = ns // down_ratio
    keys = jax.random.split(key, 6)
    p = {}
    p["wt"], p["bt"] = _fold_conv_bn(keys[0], in_channel, ic)         # theta_spatial
    p["wp"], p["bp"] = _fold_conv_bn(keys[1], in_channel, ic)         # phi_spatial
    p["wgx"], p["bgx"] = _fold_conv_bn(keys[2], in_channel, ic)       # gx_spatial
    p["wgg"], p["bgg"] = _fold_conv_bn(keys[3], 2 * in_spatial, isp)  # gg_spatial
    p["w1"], p["b1"] = _fold_conv_bn(keys[4], ns, nd)                 # W_spatial[0:3]
    p["w2"], p["b2"] = _fold_conv_bn(keys[5], nd, 1)                  # W_spatial[3:5]
    return p


# ----------------------------------------------------------------------------
# Pure-JAX reference mirroring the PyTorch NCHW forward (explicit HWxHW Gs).
# ----------------------------------------------------------------------------
def rga_spatial_reference(x, p):
    b, c, h, w = x.shape
    hw = h * w

    def conv_bn(y, wgt, bias, relu=True):
        z = jnp.einsum("bchw,dc->bdhw", y, wgt) + bias[None, :, :, None]
        return jnp.maximum(z, 0.0) if relu else z

    theta = conv_bn(x, p["wt"], p["bt"]).reshape(b, -1, hw).transpose(0, 2, 1)
    phi = conv_bn(x, p["wp"], p["bp"]).reshape(b, -1, hw)
    Gs = jnp.matmul(theta, phi)                                  # (b, hw, hw)
    Gs_in = Gs.transpose(0, 2, 1).reshape(b, hw, h, w)
    Gs_out = Gs.reshape(b, hw, h, w)
    Gs_joint = jnp.concatenate([Gs_in, Gs_out], axis=1)
    Gs_joint = conv_bn(Gs_joint, p["wgg"], p["bgg"])
    g_xs = conv_bn(x, p["wgx"], p["bgx"])
    g_xs = jnp.mean(g_xs, axis=1, keepdims=True)
    ys = jnp.concatenate([g_xs, Gs_joint], axis=1)
    W_ys = conv_bn(ys, p["w1"], p["b1"])
    W_ys = conv_bn(W_ys, p["w2"], p["b2"], relu=False)
    return jax.nn.sigmoid(jnp.broadcast_to(W_ys, x.shape))


# ----------------------------------------------------------------------------
if __name__ == "__main__":
    # Module config: in_channel=16, in_spatial=16*16=256, all ratios=8
    # -> inter_channel=2, inter_spatial=32, W_spatial hidden=4.
    B, C, H, W = 2, 16, 16, 16
    key = jax.random.PRNGKey(0)
    kx, kp = jax.random.split(key)
    x = jax.random.normal(kx, (B, C, H, W), jnp.float32)
    params = init_params(kp, in_channel=C, in_spatial=H * W)

    packed = pack_rga_weights(params, in_spatial=H * W)   # one-time weight packing
    out = jax.jit(rga_spatial_forward)(x, packed)
    out = jax.block_until_ready(out)

    ref = rga_spatial_reference(x, params)
    assert out.shape == (B, C, H, W)
    np.testing.assert_allclose(np.asarray(out), np.asarray(ref),
                               rtol=2e-2, atol=2e-2)
    print("KERNEL_OK")
</pallas_src>

<mosaic_0001>
module attributes {stable_mosaic.version = 11 : i64} {
  func.func @_rga_spatial_kernel(%arg0: i32, %arg1: memref<1x16x256xf32, #tpu.memory_space<vmem>>, %arg2: memref<32x16xf32, #tpu.memory_space<vmem>>, %arg3: memref<64x256xf32, #tpu.memory_space<vmem>>, %arg4: memref<8x32xf32, #tpu.memory_space<vmem>>, %arg5: memref<1x8xf32, #tpu.memory_space<vmem>>, %arg6: memref<88x1xf32, #tpu.memory_space<vmem>>, %arg7: memref<1x16x256xf32, #tpu.memory_space<vmem>>) attributes {dimension_semantics = [#tpu.dimension_semantics<parallel>], iteration_bounds = array<i64: 2>, scalar_prefetch = 0 : i64, scratch_operands = 0 : i64, tpu.core_type = #tpu.core_type<tc>, window_params = [{transform_indices = @transform_0, window_bounds = array<i64: 1, 16, 256>}, {pipeline_mode = #tpu.pipeline_mode<synchronous>, transform_indices = @transform_1, window_bounds = array<i64: 32, 16>}, {pipeline_mode = #tpu.pipeline_mode<synchronous>, transform_indices = @transform_2, window_bounds = array<i64: 64, 256>}, {pipeline_mode = #tpu.pipeline_mode<synchronous>, transform_indices = @transform_3, window_bounds = array<i64: 8, 32>}, {pipeline_mode = #tpu.pipeline_mode<synchronous>, transform_indices = @transform_4, window_bounds = array<i64: 1, 8>}, {pipeline_mode = #tpu.pipeline_mode<synchronous>, transform_indices = @transform_5, window_bounds = array<i64: 88, 1>}, {transform_indices = @transform_6, window_bounds = array<i64: 1, 16, 256>}]} {
    %c0 = arith.constant 0 : index
    %c0_0 = arith.constant 0 : index
    %0 = vector.load %arg2[%c0, %c0_0] : memref<32x16xf32, #tpu.memory_space<vmem>>, vector<32x16xf32>
    %c0_1 = arith.constant 0 : index
    %c0_2 = arith.constant 0 : index
    %1 = vector.load %arg3[%c0_1, %c0_2] : memref<64x256xf32, #tpu.memory_space<vmem>>, vector<64x256xf32>
    %c0_3 = arith.constant 0 : index
    %c0_4 = arith.constant 0 : index
    %2 = vector.load %arg4[%c0_3, %c0_4] : memref<8x32xf32, #tpu.memory_space<vmem>>, vector<8x32xf32>
    %c0_5 = arith.constant 0 : index
    %c0_6 = arith.constant 0 : index
    %3 = vector.load %arg5[%c0_5, %c0_6] : memref<1x8xf32, #tpu.memory_space<vmem>>, vector<1x8xf32>
    %c0_7 = arith.constant 0 : index
    %c0_8 = arith.constant 0 : index
    %4 = vector.load %arg6[%c0_7, %c0_8] : memref<88x1xf32, #tpu.memory_space<vmem>>, vector<88x1xf32>
    %5 = vector.extract_strided_slice %4 {offsets = [0, 0], sizes = [32, 1], strides = [1, 1]} : vector<88x1xf32> to vector<32x1xf32>
    %6 = vector.extract_strided_slice %4 {offsets = [32, 0], sizes = [32, 1], strides = [1, 1]} : vector<88x1xf32> to vector<32x1xf32>
    %7 = vector.extract_strided_slice %4 {offsets = [64, 0], sizes = [8, 1], strides = [1, 1]} : vector<88x1xf32> to vector<8x1xf32>
    %8 = vector.extract_strided_slice %4 {offsets = [72, 0], sizes = [8, 1], strides = [1, 1]} : vector<88x1xf32> to vector<8x1xf32>
    %9 = vector.extract_strided_slice %4 {offsets = [80, 0], sizes = [1, 1], strides = [1, 1]} : vector<88x1xf32> to vector<1x1xf32>
    %10 = tpu.iota {dimensions = array<i32: 0>} : vector<64x16xi32>
    %11 = tpu.iota {dimensions = array<i32: 1>} : vector<64x16xi32>
    %c32_i32 = arith.constant 32 : i32
    %12 = vector.broadcast %c32_i32 : i32 to vector<64x16xi32>
    %13 = arith.cmpi slt, %10, %12 : vector<64x16xi32>
    %c8_i32 = arith.constant 8 : i32
    %14 = vector.broadcast %c8_i32 : i32 to vector<64x16xi32>
    %15 = arith.cmpi slt, %11, %14 : vector<64x16xi32>
    %16 = arith.xori %13, %15 : vector<64x16xi1>
    %cst = arith.constant dense<true> : vector<64x16xi1>
    %17 = arith.xori %16, %cst : vector<64x16xi1>
    %18 = arith.extui %17 : vector<64x16xi1> to vector<64x16xi32>
    %19 = arith.sitofp %18 : vector<64x16xi32> to vector<64x16xf32>
    %c0_9 = arith.constant 0 : index
    %c0_10 = arith.constant 0 : index
    %c0_11 = arith.constant 0 : index
    %20 = vector.load %arg1[%c0_9, %c0_10, %c0_11] : memref<1x16x256xf32, #tpu.memory_space<vmem>>, vector<1x16x256xf32>
    %21 = vector.shape_cast %20 : vector<1x16x256xf32> to vector<16x256xf32>
    %cst_12 = arith.constant dense<0.000000e+00> : vector<32x256xf32>
    %22 = tpu.matmul %0, %21, %cst_12 {dimension_numbers = #tpu.dot_dimension_numbers<[1], [0], [0], [1], [0, 0, 1, 1], [], []>} : vector<32x16xf32>, vector<16x256xf32>, vector<32x256xf32> -> vector<32x256xf32>
    %23 = vector.broadcast %5 : vector<32x1xf32> to vector<32x256xf32>
    %24 = arith.addf %22, %23 : vector<32x256xf32>
    %cst_13 = arith.constant 0.000000e+00 : f32
    %25 = vector.broadcast %cst_13 : f32 to vector<32x256xf32>
    %26 = arith.maximumf %24, %25 : vector<32x256xf32>
    %27 = vector.extract_strided_slice %26 {offsets = [0, 0], sizes = [16, 256], strides = [1, 1]} : vector<32x256xf32> to vector<16x256xf32>
    %28 = vector.extract_strided_slice %26 {offsets = [8, 0], sizes = [16, 256], strides = [1, 1]} : vector<32x256xf32> to vector<16x256xf32>
    %29 = vector.extract_strided_slice %26 {offsets = [24, 0], sizes = [8, 256], strides = [1, 1]} : vector<32x256xf32> to vector<8x256xf32>
    %cst_14 = arith.constant dense<0.000000e+00> : vector<64x16xf32>
    %30 = tpu.matmul %1, %27, %cst_14 {dimension_numbers = #tpu.dot_dimension_numbers<[1], [1], [0], [0], [0, 0, 1, 0], [], []>} : vector<64x256xf32>, vector<16x256xf32>, vector<64x16xf32> -> vector<64x16xf32>
    %31 = arith.mulf %30, %19 : vector<64x16xf32>
    %cst_15 = arith.constant dense<0.000000e+00> : vector<64x256xf32>
    %32 = tpu.matmul %31, %28, %cst_15 {dimension_numbers = #tpu.dot_dimension_numbers<[1], [0], [0], [1], [0, 0, 1, 1], [], []>} : vector<64x16xf32>, vector<16x256xf32>, vector<64x256xf32> -> vector<64x256xf32>
    %33 = vector.extract_strided_slice %32 {offsets = [0, 0], sizes = [32, 256], strides = [1, 1]} : vector<64x256xf32> to vector<32x256xf32>
    %34 = vector.extract_strided_slice %32 {offsets = [32, 0], sizes = [32, 256], strides = [1, 1]} : vector<64x256xf32> to vector<32x256xf32>
    %35 = arith.addf %33, %34 : vector<32x256xf32>
    %36 = vector.broadcast %6 : vector<32x1xf32> to vector<32x256xf32>
    %37 = arith.addf %35, %36 : vector<32x256xf32>
    %cst_16 = arith.constant 0.000000e+00 : f32
    %38 = vector.broadcast %cst_16 : f32 to vector<32x256xf32>
    %39 = arith.maximumf %37, %38 : vector<32x256xf32>
    %cst_17 = arith.constant dense<0.000000e+00> : vector<256xf32>
    %40 = vector.multi_reduction <add>, %29, %cst_17 [0] : vector<8x256xf32> to vector<256xf32>
    %41 = vector.shape_cast %40 : vector<256xf32> to vector<1x256xf32>
    %42 = vector.broadcast %8 : vector<8x1xf32> to vector<8x256xf32>
    %43 = vector.broadcast %41 : vector<1x256xf32> to vector<8x256xf32>
    %44 = arith.mulf %42, %43 : vector<8x256xf32>
    %cst_18 = arith.constant dense<0.000000e+00> : vector<8x256xf32>
    %45 = tpu.matmul %2, %39, %cst_18 {dimension_numbers = #tpu.dot_dimension_numbers<[1], [0], [0], [1], [0, 0, 1, 1], [], []>} : vector<8x32xf32>, vector<32x256xf32>, vector<8x256xf32> -> vector<8x256xf32>
    %46 = arith.addf %44, %45 : vector<8x256xf32>
    %47 = vector.broadcast %7 : vector<8x1xf32> to vector<8x256xf32>
    %48 = arith.addf %46, %47 : vector<8x256xf32>
    %cst_19 = arith.constant 0.000000e+00 : f32
    %49 = vector.broadcast %cst_19 : f32 to vector<8x256xf32>
    %50 = arith.maximumf %48, %49 : vector<8x256xf32>
    %cst_20 = arith.constant dense<0.000000e+00> : vector<1x256xf32>
    %51 = tpu.matmul %3, %50, %cst_20 {dimension_numbers = #tpu.dot_dimension_numbers<[1], [0], [0], [1], [0, 0, 1, 1], [], []>} : vector<1x8xf32>, vector<8x256xf32>, vector<1x256xf32> -> vector<1x256xf32>
    %52 = vector.broadcast %9 : vector<1x1xf32> to vector<1x256xf32>
    %53 = arith.addf %51, %52 : vector<1x256xf32>
    %54 = arith.negf %53 : vector<1x256xf32>
    %55 = math.exp %54 : vector<1x256xf32>
    %cst_21 = arith.constant 1.000000e+00 : f32
    %56 = vector.broadcast %cst_21 : f32 to vector<1x256xf32>
    %57 = arith.addf %56, %55 : vector<1x256xf32>
    %58 = arith.divf %56, %57 : vector<1x256xf32>
    %59 = vector.shape_cast %58 : vector<1x256xf32> to vector<1x256xf32>
    %60 = vector.broadcast %59 : vector<1x256xf32> to vector<16x256xf32>
    %c0_22 = arith.constant 0 : index
    %c0_23 = arith.constant 0 : index
    %c0_24 = arith.constant 0 : index
    %61 = vector.load %arg7[%c0_22, %c0_23, %c0_24] : memref<1x16x256xf32, #tpu.memory_space<vmem>>, vector<1x16x256xf32>
    %62 = vector.shape_cast %61 : vector<1x16x256xf32> to vector<16x256xf32>
    %63 = vector.shape_cast %60 : vector<16x256xf32> to vector<1x16x256xf32>
    tpu.vector_store %arg7[%c0_22, %c0_23, %c0_24], %63 {strides = array<i32>} : memref<1x16x256xf32, #tpu.memory_space<vmem>>, vector<1x16x256xf32>,
    return
  }
  func.func @transform_0(%arg0: i32) -> (i32, i32, i32) {
    %c0_i32 = arith.constant 0 : i32
    %c0_i32_0 = arith.constant 0 : i32
    %c0_i32_1 = arith.constant 0 : i32
    return %arg0, %c0_i32, %c0_i32_0 : i32, i32, i32
  }
  func.func @transform_1(%arg0: i32) -> (i32, i32) {
    %c0_i32 = arith.constant 0 : i32
    %c0_i32_0 = arith.constant 0 : i32
    %c0_i32_1 = arith.constant 0 : i32
    return %c0_i32, %c0_i32_0 : i32, i32
  }
  func.func @transform_2(%arg0: i32) -> (i32, i32) {
    %c0_i32 = arith.constant 0 : i32
    %c0_i32_0 = arith.constant 0 : i32
    %c0_i32_1 = arith.constant 0 : i32
    return %c0_i32, %c0_i32_0 : i32, i32
  }
  func.func @transform_3(%arg0: i32) -> (i32, i32) {
    %c0_i32 = arith.constant 0 : i32
    %c0_i32_0 = arith.constant 0 : i32
    %c0_i32_1 = arith.constant 0 : i32
    return %c0_i32, %c0_i32_0 : i32, i32
  }
  func.func @transform_4(%arg0: i32) -> (i32, i32) {
    %c0_i32 = arith.constant 0 : i32
    %c0_i32_0 = arith.constant 0 : i32
    %c0_i32_1 = arith.constant 0 : i32
    return %c0_i32, %c0_i32_0 : i32, i32
  }
  func.func @transform_5(%arg0: i32) -> (i32, i32) {
    %c0_i32 = arith.constant 0 : i32
    %c0_i32_0 = arith.constant 0 : i32
    %c0_i32_1 = arith.constant 0 : i32
    return %c0_i32, %c0_i32_0 : i32, i32
  }
  func.func @transform_6(%arg0: i32) -> (i32, i32, i32) {
    %c0_i32 = arith.constant 0 : i32
    %c0_i32_0 = arith.constant 0 : i32
    %c0_i32_1 = arith.constant 0 : i32
    return %arg0, %c0_i32, %c0_i32_0 : i32, i32, i32
  }
}

</mosaic_0001>

<bundles_post_ra>
// kernel: rga_spatial_forward.1
= control target key start
LH: loop header
LB: loop body
LE: loop exit
PB: predicated region body
PF: predicated region fallthrough
CT: control target
= control target key end

     0   :  { %s1161_s21 = smov 0   ;;  %s1325_s0 = inlined_call_operand.vmem [shape: f32[2,16,256], index: 0, kind: input, shape index: {}]   ;;  %s1326_s1 = inlined_call_operand.vmem [shape: f32[32,16], index: 1, kind: input, shape index: {}]   ;;  %s1327_s2 = inlined_call_operand.vmem [shape: f32[64,256], index: 2, kind: input, shape index: {}]   ;;  %s1328_s3 = inlined_call_operand.vmem [shape: f32[8,32], index: 3, kind: input, shape index: {}]   ;;  %s1329_s4 = inlined_call_operand.vmem [shape: f32[1,8], index: 4, kind: input, shape index: {}]   ;;  %s1330_s5 = inlined_call_operand.vmem [shape: f32[88,1], index: 5, kind: input, shape index: {}]   ;;  %s1331_s6 = inlined_call_operand.vmem [shape: f32[2,16,256], index: 6, kind: output, shape index: {}]  }
   0x1 LB: > { %s1029_s22 = sadd.s32 4294967295, %s1121_s21   ;;  %p1033_p0 = scmp.ge.s32.totalorder %s1121_s21, 1  ;;  %s1121_s21 = sphi %s1161_s21, %s16_s21  }
   0x2   : > { %p212_p1 = scmp.lt.s32.totalorder %s1121_s21, 3 }
   0x4   : > { %p213_p2 = pnand %p1033_p0, %p212_p1 }
   0x5   : > { %p242_p3 = scmp.lt.s32.totalorder (!%p213_p2), %s1029_s22, 1  ;;  %v1123_v0 = vmov (!%p213_p2), 0.0   ;;  %v274_v1 = vld [vmem:[%s1330_s5] sm:$0xff] (!%p213_p2)  ;;  %v1124_v2 = vmov (!%p213_p2), 0   ;;  %v276_v3 = vld [vmem:[%s1330_s5 + $0x10] sm:$0xff] (!%p213_p2)  ;;  %v275_v4 = vld [vmem:[%s1330_s5 + $0x8] sm:$0xff] (!%p213_p2) }
   0x6   : > { %216 = sbr.rel (%p213_p2) target bundleno = 1184 (0x4a0), region = 44  ;;  %438 = vmatprep.mubr.f32.mxu0 (!%p213_p2), %v1123_v0  ;;  %1105 = vset.pattern.permute.xlu0 (!%p213_p2), %v1124_v2  ;;  %v278_v5 = vld [vmem:[%s1330_s5 + $0x20] sm:$0xff] (!%p213_p2)  ;;  %v279_v12 = vld [vmem:[%s1330_s5 + $0x28] sm:$0xff] (!%p213_p2)  ;;  %v280_v13 = vld [vmem:[%s1330_s5 + $0x30] sm:$0xff] (!%p213_p2)  ;;  %vm361_vm0 = vcmask (!%p213_p2), 130048   ;;  %vm1125_vm2 = vmmov (!%p213_p2), 1  }
   0x7   : > { %1106 = vset.pattern.permute.xlu1 (!%p213_p2), %v1124_v2  ;;  %343 = vperm.xlu0 (!%p213_p2), %1105, %v274_v1   ;;  %v252_v14 = vld [vmem:[%s1326_s1] sm:$0xff] (!%p213_p2)  ;;  %v281_v15 = vld [vmem:[%s1330_s5 + $0x38] sm:$0xff] (!%p213_p2)  ;;  %v253_v17 = vld [vmem:[%s1326_s1 + $0x8] sm:$0xff] (!%p213_p2)  ;;  %vm784_vm6 = vcmask (!%p213_p2), 261120   ;;  %vm875_vm7 = vcmask (!%p213_p2), 64512  }
   0x8   : > { %353 = vperm.xlu1 (!%p213_p2), %1106, %v276_v3   ;;  %v277_v16 = vld [vmem:[%s1330_s5 + $0x18] sm:$0xff] (!%p213_p2)  ;;  %v283_v18 = vld [vmem:[%s1330_s5 + $0x48] sm:$0xff] (!%p213_p2)  ;;  %v254_v19 = vld [vmem:[%s1326_s1 + $0x10] sm:$0xff] (!%p213_p2)  ;;  %v294_v3 = vlaneseq (!%p213_p2) }
   0x9   : > { %v284_v20 = vld [vmem:[%s1330_s5 + $0x50] sm:$0xff] (!%p213_p2)  ;;  %v255_v21 = vld [vmem:[%s1326_s1 + $0x18] sm:$0xff] (!%p213_p2)  ;;  %v257_v22 = vld [vmem:[%s1327_s2 + $0x8] sm:$0xff] (!%p213_p2) }
   0xa   : > { %535 = vmatprep.mubr.f32.mxu1 (!%p213_p2), %v257_v22  ;;  %v282_v23 = vld [vmem:[%s1330_s5 + $0x40] sm:$0xff] (!%p213_p2)  ;;  %v259_v52 = vld [vmem:[%s1327_s2 + $0x18] sm:$0xff] (!%p213_p2)  ;;  %v258_v53 = vld [vmem:[%s1327_s2 + $0x10] sm:$0xff] (!%p213_p2) }
   0xb   : > { %348 = vperm.xlu0 (!%p213_p2), %1105, %v275_v4   ;;  %v256_v51 = vld [vmem:[%s1327_s2] sm:$0xff] (!%p213_p2)  ;;  %v261_v54 = vld [vmem:[%s1327_s2 + $0x28] sm:$0xff] (!%p213_p2)  ;;  %v263_v56 = vld [vmem:[%s1327_s2 + $0x38] sm:$0xff] (!%p213_p2)  ;;  %v295_v4 = vand.u32 (!%p213_p2), 127, %v294_v3 }
   0xc   : > { %731 = vperm.xlu1 (!%p213_p2), %1106, %v278_v5   ;;  %v260_v55 = vld [vmem:[%s1327_s2 + $0x20] sm:$0xff] (!%p213_p2)  ;;  %v262_v57 = vld [vmem:[%s1327_s2 + $0x30] sm:$0xff] (!%p213_p2)  ;;  %v265_v58 = vld [vmem:[%s1327_s2 + $0x48] sm:$0xff] (!%p213_p2) }
   0xd   : > { %s1333_s22 = smov (!%p242_p3, %s1029_s22), 1  ;;  %v264_v59 = vld [vmem:[%s1327_s2 + $0x40] sm:$0xff]  ;;  %v267_v60 = vld [vmem:[%s1327_s2 + $0x58] sm:$0xff]  ;;  %v266_v61 = vld [vmem:[%s1327_s2 + $0x50] sm:$0xff]  ;;  %vm304_vm1 = vcmp.lt.s32.totalorder %v295_v4, 8 }
   0xe   : > { %s1064_s27 = sshll.u32 %s1333_s22, 5  ;;  %v269_v62 = vld [vmem:[%s1327_s2 + $0x68] sm:$0xff]  ;;  %v268_v63 = vld [vmem:[%s1327_s2 + $0x60] sm:$0xff]  ;;  %v271_v1 = vld [vmem:[%s1327_s2 + $0x78] sm:$0xff] }
   0xf   : > { %s246_s8 = scalar_lea.vmem %s1325_s0, %s1064_s27  ;;  %736 = vperm.xlu0 %1105, %v279_v12   ;;  %v270_v2 = vld [vmem:[%s1327_s2 + $0x70] sm:$0xff]  ;;  %vm305_vm3 = vmxor %vm1125_vm2, %vm304_vm1 }
  0x10   : > { %v338_v6 = vld [vmem:[%s246_s8 + $0x8] sm:$0xff]  ;;  %v340_v7 = vld [vmem:[%s246_s8 + $0x18] sm:$0xff]  ;;  %v337_v8 = vld [vmem:[%s246_s8] sm:$0xff]  ;;  %741 = vperm.xlu1 %1106, %v280_v13  }
  0x11   : > { %v1066_v9 = vpack.c.bf16 %v340_v7, %v338_v6  ;;  %v339_v10 = vld [vmem:[%s246_s8 + $0x10] sm:$0xff]  ;;  %vm313_vm4 = vmxor %vm305_vm3, %vm1125_vm2  ;;  %s251_s8 = scalar_lea.vmem %s1331_s6, %s1064_s27 }
  0x12   : > { %v1068_v11 = vpack.c.bf16 %v339_v10, %v337_v8  ;;  %v1038_v5 = vsel %vm313_vm4, 1.0, %v1123_v0  ;;  %vm317_vm5 = vmxor %vm304_vm1, %vm1125_vm2 }
  0x13   : > { %1067 = vmatprep.subr.bf16.mxu0 %v1066_v9  ;;  %746 = vperm.xlu0 %1105, %v281_v15  }
  0x14   : > { %1069 = vmatpush1.bf16.msra.mxu0 %v1068_v11  ;;  %358 = vperm.xlu1 %1106, %v277_v16  }
  0x17   : > { %1046 = vmatmul.mubr.msk.f32.vlgmr.msra.gmra.mrb[0].mxu0 %vm361_vm0, %v252_v14  ;;  %779 = vperm.xlu0 %1105, %v283_v18   ;;  %v1042_v18 = vsel %vm317_vm5, 1.0, %v1123_v0 }
  0x18   : > { %444 = vmatprep.mubr.f32.mxu0 %v1123_v0  ;;  %863 = vperm.xlu1 %1106, %v282_v23  }
  0x1b   : > { %1047 = vmatmul.mubr.msk.f32.gmra.mrb[2].mxu0 %vm361_vm0, %v253_v17  ;;  %872 = vperm.xlu0 %1105, %v284_v20  }
  0x1c   : > { %450 = vmatprep.mubr.f32.mxu0 %v1123_v0 }
  0x1f   : > { %1048 = vmatmul.mubr.msk.f32.gmra.mrb[4].mxu0 %vm361_vm0, %v254_v19 }
  0x20   : > { %456 = vmatprep.mubr.f32.mxu0 %v1123_v0 }
  0x23   : > { %1049 = vmatmul.mubr.msk.f32.gmra.mrb[6].mxu0 %vm361_vm0, %v255_v21 }
  0x24   : > { %672 = vmatprep.mubr.f32.mxu0 %v1123_v0 }
  0x86   : > { %v344_v24 = vpop.permute.xlu0 %343 }
  0x87   : > { %v354_v36 = vpop.permute.xlu1 %353 }
  0x8a   : > { %v349_v28 = vpop.permute.xlu0 %348 }
  0xea   : > { %v440_v25 = vpop.f32.mrb[0].mxu0 }
  0xeb   : > { %v442_v26 = vpop.f32.mrb[1].mxu0  ;;  %v441_v27 = vadd.f32 %v440_v25, %v344_v24 }
  0xec   : > { %v443_v29 = vadd.f32 %v442_v26, %v344_v24 }
  0xed   : > { %v463_v34 = vmax.f32 %v441_v27, 0.0 }
  0xee   : > { %v446_v30 = vpop.f32.mrb[2].mxu0  ;;  %v464_v37 = vmax.f32 %v443_v29, 0.0 }
  0xef   : > { %v447_v31 = vadd.f32 %v446_v30, %v349_v28  ;;  %v448_v32 = vpop.f32.mrb[3].mxu0 }
  0xf0   : > { %v449_v33 = vadd.f32 %v448_v32, %v349_v28 }
  0xf1   : > { %v465_v35 = vmax.f32 %v447_v31, 0.0 }
  0xf2   : > { %v466_v38 = vmax.f32 %v449_v33, 0.0  ;;  %v452_v39 = vpop.f32.mrb[4].mxu0  ;;  %v732_v33 = vpop.permute.xlu1 %731 }
  0xf3   : > { %v453_v40 = vadd.f32 %v452_v39, %v354_v36  ;;  %v454_v41 = vpop.f32.mrb[5].mxu0  ;;  %v1072_v42 = vpack.c.bf16 %v465_v35, %v463_v34 }
  0xf4   : > { %v455_v43 = vadd.f32 %v454_v41, %v354_v36  ;;  %v1070_v44 = vpack.c.bf16 %v466_v38, %v464_v37 }
  0xf5   : > { %v467_v45 = vmax.f32 %v453_v40, 0.0 }
  0xf6   : > { %v468_v46 = vmax.f32 %v455_v43, 0.0  ;;  %v1234_v47 = vpop.f32.mrb[6].mxu0  ;;  %1071 = vmatprep.subr.bf16.mxu1 %v1070_v44 }
  0xf7   : > { %v1076_v48 = vpack.c.bf16 %v467_v45, %v465_v35  ;;  %v1236_v49 = vpop.f32.mrb[7].mxu0  ;;  %1073 = vmatpush1.bf16.xpose.msra.mxu1 %v1072_v42  ;;  %v737_v35 = vpop.permute.xlu0 %736 }
  0xf8   : > { %v1074_v50 = vpack.c.bf16 %v468_v46, %v466_v38 }
  0xfa   : > { %1075 = vmatprep.subr.bf16.mxu0 %v1074_v50  ;;  %v742_v50 = vpop.permute.xlu1 %741 }
  0xfb   : > { %1077 = vmatpush1.bf16.msra.mxu0 %v1076_v48 }
  0xfe   : > { %536 = vmatmul.mubr.f32.vlgmr.msra.gmra.mrb[0].mxu1 %v256_v51  ;;  %v359_v4 = vpop.permute.xlu1 %358 }
  0xff   : > { %540 = vmatprep.mubr.f32.mxu1 %v259_v52 }
 0x102   : > { %541 = vmatmul.mubr.f32.gmra.mrb[2].mxu1 %v258_v53  ;;  %v747_v53 = vpop.permute.xlu0 %746 }
 0x103   : > { %545 = vmatprep.mubr.f32.mxu1 %v261_v54 }
 0x106   : > { %546 = vmatmul.mubr.f32.gmra.mrb[4].mxu1 %v260_v55 }
 0x107   : > { %550 = vmatprep.mubr.f32.mxu1 %v263_v56 }
 0x10a   : > { %551 = vmatmul.mubr.f32.gmra.mrb[6].mxu1 %v262_v57 }
 0x10b   : > { %555 = vmatprep.mubr.f32.mxu1 %v265_v58 }
 0x10e   : > { %556 = vmatmul.mubr.f32.gmra.mrb[8].mxu1 %v264_v59 }
 0x10f   : > { %560 = vmatprep.mubr.f32.mxu1 %v267_v60 }
 0x112   : > { %561 = vmatmul.mubr.f32.gmra.mrb[10].mxu1 %v266_v61 }
 0x113   : > { %565 = vmatprep.mubr.f32.mxu1 %v269_v62 }
 0x116   : > { %566 = vmatmul.mubr.f32.gmra.mrb[12].mxu1 %v268_v63 }
 0x117   : > { %570 = vmatprep.mubr.f32.mxu1 %v271_v1 }
 0x11a   : > { %571 = vmatmul.mubr.f32.gmra.mrb[14].mxu1 %v270_v2  ;;  %v272_v2 = vld [vmem:[%s1328_s3] sm:$0xff] }
 0x11b   : > { %852 = vmatprep.mubr.f32.mxu1 %v1123_v0 }
 0x1d1   : > { %v537_v6 = vpop.f32.mrb[0].mxu1 }
 0x1d2   : > { %v576_v7 = vmul.f32 %v1038_v5, %v537_v6  ;;  %v539_v8 = vpop.f32.mrb[1].mxu1  ;;  %v461_v6 = vadd.f32 %v1236_v49, %v359_v4 }
 0x1d4   : > { %1050 = vmatmul.mubr.msk.f32.vlgmr.msra.gmra.mrb[8].mxu0 %vm361_vm0, %v576_v7  ;;  %v470_v8 = vmax.f32 %v461_v6, 0.0 }
 0x1d5   : > { %v542_v9 = vpop.f32.mrb[2].mxu1  ;;  %678 = vmatprep.mubr.f32.mxu0 %v1123_v0 }
 0x1d6   : > { %v577_v10 = vmul.f32 %v1038_v5, %v542_v9  ;;  %v544_v11 = vpop.f32.mrb[3].mxu1 }
 0x1d8   : > { %1051 = vmatmul.mubr.msk.f32.gmra.mrb[10].mxu0 %vm361_vm0, %v577_v10  ;;  %v771_v10 = vrot.slane %v470_v8, 4 }
 0x1d9   : > { %v547_v12 = vpop.f32.mrb[4].mxu1  ;;  %684 = vmatprep.mubr.f32.mxu0 %v1123_v0 }
 0x1da   : > { %v578_v13 = vmul.f32 %v1038_v5, %v547_v12  ;;  %v549_v14 = vpop.f32.mrb[5].mxu1  ;;  %v772_v12 = vadd.f32 %v771_v10, %v470_v8 }
 0x1dc   : > { %1052 = vmatmul.mubr.msk.f32.gmra.mrb[12].mxu0 %vm361_vm0, %v578_v13  ;;  %v773_v14 = vrot.slane %v772_v12, 2 }
 0x1dd   : > { %v552_v15 = vpop.f32.mrb[6].mxu1  ;;  %690 = vmatprep.mubr.f32.mxu0 %v1123_v0 }
 0x1de   : > { %v579_v16 = vmul.f32 %v1038_v5, %v552_v15  ;;  %v554_v17 = vpop.f32.mrb[7].mxu1  ;;  %v459_v5 = vadd.f32 %v1234_v47, %v359_v4 }
 0x1e0   : > { %1053 = vmatmul.mubr.msk.f32.gmra.mrb[14].mxu0 %vm361_vm0, %v579_v16  ;;  %v469_v7 = vmax.f32 %v459_v5, 0.0  ;;  %v774_v16 = vadd.f32 %v773_v14, %v772_v12 }
 0x1e1   : > { %v557_v19 = vpop.f32.mrb[8].mxu1  ;;  %696 = vmatprep.mubr.f32.mxu0 %v1123_v0 }
 0x1e2   : > { %v580_v20 = vmul.f32 %v1042_v18, %v557_v19  ;;  %v559_v21 = vpop.f32.mrb[9].mxu1  ;;  %v765_v9 = vrot.slane %v469_v7, 4 }
 0x1e4   : > { %1054 = vmatmul.mubr.msk.f32.gmra.mrb[8].mxu0 %vm361_vm0, %v580_v20  ;;  %v766_v11 = vadd.f32 %v765_v9, %v469_v7 }
 0x1e5   : > { %v562_v22 = vpop.f32.mrb[10].mxu1  ;;  %702 = vmatprep.mubr.f32.mxu0 %v1123_v0 }
 0x1e6   : > { %v581_v23 = vmul.f32 %v1042_v18, %v562_v22  ;;  %v564_v24 = vpop.f32.mrb[11].mxu1  ;;  %v767_v13 = vrot.slane %v766_v11, 2 }
 0x1e7   : > { %v864_v24 = vpop.permute.xlu1 %863 }
 0x1e8   : > { %1055 = vmatmul.mubr.msk.f32.gmra.mrb[10].mxu0 %vm361_vm0, %v581_v23  ;;  %v768_v15 = vadd.f32 %v767_v13, %v766_v11 }
 0x1e9   : > { %v567_v25 = vpop.f32.mrb[12].mxu1  ;;  %708 = vmatprep.mubr.f32.mxu0 %v1123_v0 }
 0x1ea   : > { %v582_v26 = vmul.f32 %v1042_v18, %v567_v25  ;;  %v569_v27 = vpop.f32.mrb[13].mxu1  ;;  %v769_v17 = vrot.slane %v768_v15, 1 }
 0x1ec   : > { %1056 = vmatmul.mubr.msk.f32.gmra.mrb[12].mxu0 %vm361_vm0, %v582_v26  ;;  %v770_v19 = vadd.f32 %v769_v17, %v768_v15 }
 0x1ed   : > { %v572_v28 = vpop.f32.mrb[14].mxu1  ;;  %714 = vmatprep.mubr.f32.mxu0 %v1123_v0 }
 0x1ee   : > { %v583_v29 = vmul.f32 %v1042_v18, %v572_v28  ;;  %v574_v30 = vpop.f32.mrb[15].mxu1  ;;  %v775_v18 = vrot.slane %v774_v16, 1 }
 0x1ef   : > { %v273_v30 = vld [vmem:[%s1329_s4] sm:$0x1] }
 0x1f0   : > { %1057 = vmatmul.mubr.msk.f32.gmra.mrb[14].mxu0 %vm361_vm0, %v583_v29  ;;  %v776_v20 = vadd.f32 %v775_v18, %v774_v16 }
 0x2b7   : > { %v698_v31 = vpop.f32.mrb[8].mxu0 }
 0x2b8   : > { %v700_v32 = vpop.f32.mrb[9].mxu0  ;;  %v749_v34 = vadd.f32 %v732_v33, %v698_v31 }
 0x2b9   : > { %v750_v36 = vadd.f32 %v732_v33, %v700_v32 }
 0x2ba   : > { %v757_v41 = vmax.f32 %v749_v34, 0.0 }
 0x2bb   : > { %v704_v37 = vpop.f32.mrb[10].mxu0  ;;  %v758_v43 = vmax.f32 %v750_v36, 0.0 }
 0x2bc   : > { %v751_v38 = vadd.f32 %v737_v35, %v704_v37  ;;  %v706_v39 = vpop.f32.mrb[11].mxu0 }
 0x2bd   : > { %v752_v40 = vadd.f32 %v737_v35, %v706_v39 }
 0x2be   : > { %v759_v42 = vmax.f32 %v751_v38, 0.0 }
 0x2bf   : > { %v760_v44 = vmax.f32 %v752_v40, 0.0  ;;  %v710_v45 = vpop.f32.mrb[12].mxu0 }
 0x2c0   : > { %v1080_v46 = vpack.c.bf16 %v759_v42, %v757_v41  ;;  %v712_v48 = vpop.f32.mrb[13].mxu0  ;;  %v753_v52 = vadd.f32 %v742_v50, %v710_v45  ;;  %v963_v42 = vshrl.u32 %v294_v3, 7 }
 0x2c1   : > { %v1078_v51 = vpack.c.bf16 %v760_v44, %v758_v43  ;;  %v754_v54 = vadd.f32 %v742_v50, %v712_v48 }
 0x2c2   : > { %v761_v59 = vmax.f32 %v753_v52, 0.0  ;;  %v964_v43 = vsub.s32 0, %v963_v42 }
 0x2c3   : > { %v716_v55 = vpop.f32.mrb[14].mxu0  ;;  %1079 = vmatprep.subr.bf16.mxu1 %v1078_v51  ;;  %v762_v61 = vmax.f32 %v754_v54, 0.0 }
 0x2c4   : > { %v755_v56 = vadd.f32 %v747_v53, %v716_v55  ;;  %v718_v57 = vpop.f32.mrb[15].mxu0  ;;  %1081 = vmatpush1.bf16.msra.mxu1 %v1080_v46 }
 0x2c5   : > { %v756_v58 = vadd.f32 %v747_v53, %v718_v57 }
 0x2c6   : > { %v763_v60 = vmax.f32 %v755_v56, 0.0 }
 0x2c7   : > { %v764_v62 = vmax.f32 %v756_v58, 0.0 }
 0x2c8   : > { %v1084_v63 = vpack.c.bf16 %v763_v60, %v761_v59 }
 0x2c9   : > { %v1082_v1 = vpack.c.bf16 %v764_v62, %v762_v61 }
 0x2cb   : > { %1083 = vmatprep.subr.bf16.mxu1 %v1082_v1 }
 0x2cc   : > { %1085 = vmatpush1.bf16.msra.mxu1 %v1084_v63 }
 0x2cf   : > { %1058 = vmatmul.mubr.msk.f32.vlgmr.msra.gmra.mrb[16].mxu1 %vm784_vm6, %v272_v2 }
 0x2d0   : > { %943 = vmatprep.mubr.f32.mxu1 %v1123_v0  ;;  %v780_v0 = vpop.permute.xlu0 %779 }
 0x2d1   : > { %v782_v21 = vmul.f32 %v780_v0, %v770_v19  ;;  %v783_v47 = vmul.f32 %v780_v0, %v776_v20 }
 0x2d4   : > { %v873_v31 = vpop.permute.xlu0 %872 }
 0x3a2   : > { %v854_v22 = vpop.f32.mrb[16].mxu1 }
 0x3a3   : > { %v859_v23 = vadd.f32 %v854_v22, %v782_v21  ;;  %v856_v49 = vpop.f32.mrb[17].mxu1 }
 0x3a4   : > { %v860_v25 = vadd.f32 %v856_v49, %v783_v47 }
 0x3a5   : > { %v866_v26 = vadd.f32 %v864_v24, %v859_v23 }
 0x3a6   : > { %v867_v27 = vadd.f32 %v864_v24, %v860_v25 }
 0x3a7   : > { %v868_v29 = vmax.f32 %v866_v26, 0.0 }
 0x3a8   : > { %v869_v28 = vmax.f32 %v867_v27, 0.0 }
 0x3aa   : > { %879 = vmatprep.subr.mxu1 %v869_v28 }
 0x3ab   : > { %880 = vmatpush1.msra.mxu1 %v868_v29 }
 0x3ac   : > { %1059 = vmatmul.mubr.msk.f32.vlgmr.msra.gmra.mrb[18].mxu1 %vm875_vm7, %v273_v30 }
 0x47f   : > { %v945_v32 = vpop.f32.mrb[18].mxu1 }
 0x480   : > { %v946_v33 = vadd.f32 %v945_v32, %v873_v31  ;;  %v947_v34 = vpop.f32.mrb[19].mxu1 }
 0x481   : > { %v948_v35 = vadd.f32 %v947_v34, %v873_v31 }
 0x482   : > { %v1060_v36 = vmul.f32 -1.442695, %v946_v33 }
 0x483   : > { %v1061_v37 = vmul.f32 -1.442695, %v948_v35 }
 0x484   : > { %1107 = vpow2.f32 %v1060_v36 }
 0x485   : > { %1109 = vpow2.f32 %v1061_v37 }
 0x48e   : > { %v1108_v38 = vpop.eup %1107 }
 0x48f   : > { %v1110_v39 = vpop.eup %1109  ;;  %v956_v40 = vadd.f32 1.0, %v1108_v38 }
 0x490   : > { %v957_v41 = vadd.f32 1.0, %v1110_v39 }
 0x491   : > { %1111 = vrcp.f32 %v956_v40 }
 0x492   : > { %1113 = vrcp.f32 %v957_v41 }
 0x49b   : > { %v1112_v44 = vpop.eup %1111 }
 0x49c   : > { %v1114_v45 = vpop.eup %1113  ;;  %v965_v46 = vrot.slane %v1112_v44, %v964_v43 }
 0x49d   : > { %v969_v48 = vrot.slane %v1114_v45, %v964_v43 }
 0x49e   : > { %970 = vst [vmem:[%s251_s8] sm:$0xff] %v965_v46  ;;  %972 = vst [vmem:[%s251_s8 + $0x10] sm:$0xff] %v965_v46 }
 0x49f   : > { %971 = vst [vmem:[%s251_s8 + $0x8] sm:$0xff] %v969_v48  ;;  %973 = vst [vmem:[%s251_s8 + $0x18] sm:$0xff] %v969_v48 }
 0x4a0 PF: > { %s16_s21 = sadd.s32 1, %s1121_s21  }
 0x4a1   : > { %p13_p4 = scmp.ge.s32.totalorder %s16_s21, 4  }
 0x4a3   :  { %15 = sbr.rel (!%p13_p4) target bundleno = 1 (0x1), region = 74 }

</bundles_post_ra>
